<compile_context>
chip_gen: v7x
topology: tpu7x:2x2x1
jax: 0.10.0
libtpu: 0.0.40
codegen_flags: <defaults>
</compile_context>

<pallas_src>
import functools

import jax
import jax.numpy as jnp
from jax.experimental import pallas as pl
from jax.experimental.pallas import tpu as pltpu


# ----------------------------- helpers --------------------------------------


def _round_up(x, m):
    return (x + m - 1) // m * m


def _pick_tile(padded, cap):
    """Largest multiple of 128 <= cap that divides `padded` (padded % 128 == 0)."""
    cap = max(128, cap - cap % 128)
    for t in range(cap, 0, -128):
        if padded % t == 0:
            return t
    return 128


def _tanh_bf16():
    """bf16 transcendentals / VALU are native on v6e & v7x; keep f32 elsewhere.
    Falls back to the always-correct f32 path if the device kind is unknown
    (CPU tracing / AOT / interpret mode)."""
    try:
        kind = jax.devices()[0].device_kind.lower()
    except Exception:
        return False
    return ("v6" in kind) or ("v7" in kind)


def _vmem_limit_bytes():
    """Per-generation scoped VMEM limit (v7x: 64 MiB physical, v5e/v6e: 128 MiB)."""
    try:
        cap = pltpu.get_tpu_info().vmem_capacity_bytes
        return int(min(cap * 3 // 4, 100 * 1024 * 1024))
    except Exception:
        return 48 * 1024 * 1024


# ------------------------ fused FALayer-pair kernel ---------------------------


def falayer_pair_kernel(sd2_ref, ss2_ref, sd3_ref, ss3_ref, dv_ref, du_ref,
                        adj_ref, h_ref, z2_ref, z3_ref,
                        *, tile_u, h_resident, tanh_bf16):
    """One (V-tile, U-tile) step of
         z2 = (tanh(s_dst2 + s_src2^T) * d_v*d_u * adj) @ h
         z3 = (tanh(s_dst3 + s_src3^T) * d_v*d_u * adj) @ h
       sharing a single read of the adjacency tile.  Outputs accumulate in
       place (output blocks are resident across the U reduction axis)."""
    u = pl.program_id(1)

    @pl.when(u == 0)
    def _():
        z2_ref[...] = jnp.zeros_like(z2_ref)
        z3_ref[...] = jnp.zeros_like(z3_ref)

    # Exact degree scaling in f32; adjacency is a 0/1 int8 mask (1 byte/edge).
    # (On v5e a where() on the int mask would save the convert; convert+mul is
    # used for maximum lowering portability.)
    dd = dv_ref[...] * du_ref[...]                          # [TV,1]*[1,TU] -> [TV,TU]
    scale = dd * adj_ref[...].astype(jnp.float32)           # zero where no edge

    score2 = sd2_ref[...] + ss2_ref[...]                    # [TV,TU] f32
    score3 = sd3_ref[...] + ss3_ref[...]

    if tanh_bf16:
        scale_b = scale.astype(jnp.bfloat16)
        e2 = jnp.tanh(score2.astype(jnp.bfloat16)) * scale_b
        e3 = jnp.tanh(score3.astype(jnp.bfloat16)) * scale_b
    else:
        e2 = (jnp.tanh(score2) * scale).astype(jnp.bfloat16)
        e3 = (jnp.tanh(score3) * scale).astype(jnp.bfloat16)

    if h_resident:
        start = pl.multiple_of(u * tile_u, tile_u)
        h_blk = h_ref[pl.ds(start, tile_u), :]
    else:
        h_blk = h_ref[...]

    z2_ref[...] += jnp.dot(e2, h_blk, preferred_element_type=jnp.float32)
    z3_ref[...] += jnp.dot(e3, h_blk, preferred_element_type=jnp.float32)


def prepare_graph(adj, d):
    """Hoisted per-graph prep: pad to a multiple of 128 and ship the raw 0/1
    adjacency as int8 (no N^2 f32 temporary; degree scaling stays f32)."""
    n = adj.shape[0]
    n_pad = _round_up(n, 128)
    adj_i8 = jnp.pad(adj.astype(jnp.int8), ((0, n_pad - n), (0, n_pad - n)))
    d_pad = jnp.pad(d.astype(jnp.float32), (0, n_pad - n))
    return adj_i8, d_pad


def fa_layer_pair(h, graph, gate2_w, gate2_b, gate3_w, gate3_b):
    """Two FALayer propagations (different gates, same h and graph) fused into
    one pallas_call.  h: [N, D] f32.  Returns (z2, z3), each [N, D] f32."""
    adj_i8, d_norm = graph
    n, d_feat = h.shape
    n_pad = adj_i8.shape[0]
    d_pad = _round_up(d_feat, 128)                          # lane-dense output width

    hf = h.astype(jnp.float32)

    def gate_scores(gw, gb):
        # Hoisted O(N*D) gate matvecs; bias folded into the destination score.
        s_dst = (hf @ gw[:d_feat].astype(jnp.float32) + gb).reshape(n, 1)
        s_src = (hf @ gw[d_feat:].astype(jnp.float32)).reshape(1, n)
        s_dst = jnp.pad(s_dst, ((0, n_pad - n), (0, 0)))
        s_src = jnp.pad(s_src, ((0, 0), (0, n_pad - n)))
        return s_dst, s_src

    sd2, ss2 = gate_scores(gate2_w, gate2_b)
    sd3, ss3 = gate_scores(gate3_w, gate3_b)

    d_v = d_norm.reshape(n_pad, 1)
    d_u = d_norm.reshape(1, n_pad)

    h_src = jnp.pad(hf, ((0, n_pad - n), (0, d_pad - d_feat))).astype(jnp.bfloat16)

    # Big tiles amortize the ~0.35us/step pipeline overhead; cap tile_v at
    # n_pad//2 so the "parallel" V axis can span both TensorCores on v7x.
    tv_cap = min(512, n_pad if n_pad < 256 else n_pad // 2)
    tile_v = _pick_tile(n_pad, tv_cap)
    tile_u = _pick_tile(n_pad, min(1024, n_pad))
    grid = (n_pad // tile_v, n_pad // tile_u)

    # Keep the full source-feature matrix VMEM-resident when it is small
    # enough (single DMA, no per-V-tile re-stream); otherwise tile along U.
    h_resident = (n_pad * d_pad * 2) <= 16 * 1024 * 1024
    if h_resident:
        h_spec = pl.BlockSpec((n_pad, d_pad), lambda v, u: (0, 0))
    else:
        h_spec = pl.BlockSpec((tile_u, d_pad), lambda v, u: (u, 0))

    kernel = functools.partial(
        falayer_pair_kernel,
        tile_u=tile_u, h_resident=h_resident, tanh_bf16=_tanh_bf16())

    z2, z3 = pl.pallas_call(
        kernel,
        out_shape=(jax.ShapeDtypeStruct((n_pad, d_pad), jnp.float32),
                   jax.ShapeDtypeStruct((n_pad, d_pad), jnp.float32)),
        grid_spec=pltpu.PrefetchScalarGridSpec(
            num_scalar_prefetch=0,
            grid=grid,
            in_specs=[
                pl.BlockSpec((tile_v, 1), lambda v, u: (v, 0)),        # s_dst (gate2)
                pl.BlockSpec((1, tile_u), lambda v, u: (0, u)),        # s_src (gate2)
                pl.BlockSpec((tile_v, 1), lambda v, u: (v, 0)),        # s_dst (gate3)
                pl.BlockSpec((1, tile_u), lambda v, u: (0, u)),        # s_src (gate3)
                pl.BlockSpec((tile_v, 1), lambda v, u: (v, 0)),        # d_v
                pl.BlockSpec((1, tile_u), lambda v, u: (0, u)),        # d_u
                pl.BlockSpec((tile_v, tile_u), lambda v, u: (v, u)),   # adjacency (int8)
                h_spec,                                                # h (bf16)
            ],
            out_specs=[pl.BlockSpec((tile_v, d_pad), lambda v, u: (v, 0)),
                       pl.BlockSpec((tile_v, d_pad), lambda v, u: (v, 0))],
        ),
        compiler_params=pltpu.CompilerParams(
            dimension_semantics=("parallel", "arbitrary"),
            vmem_limit_bytes=_vmem_limit_bytes(),
        ),
    )(sd2, ss2, sd3, ss3, d_v, d_u, adj_i8, h_src)

    return z2[:n, :d_feat], z3[:n, :d_feat]


# ------------------------ small Pallas linear kernel --------------------------


def linear_kernel(x_ref, w_ref, b_ref, o_ref, *, relu):
    y = jnp.dot(x_ref[...], w_ref[...], preferred_element_type=jnp.float32)
    y = y + b_ref[...]
    if relu:
        y = jnp.maximum(y, 0.0)
    o_ref[...] = y


def linear(x, w, b, relu=False):
    """y = x @ w + b.  Output channels padded to 128 -> lane-dense (unmasked) stores."""
    n, d_in = x.shape
    d_out = w.shape[1]
    n_pad = _round_up(n, 128)
    d_out_pad = _round_up(d_out, 128)

    x_p = jnp.pad(x.astype(jnp.float32), ((0, n_pad - n), (0, 0)))
    w_p = jnp.pad(w.astype(jnp.float32), ((0, 0), (0, d_out_pad - d_out)))
    b_p = jnp.pad(b.astype(jnp.float32).reshape(1, d_out),
                  ((0, 0), (0, d_out_pad - d_out)))

    tile_n = _pick_tile(n_pad, 512)

    out = pl.pallas_call(
        functools.partial(linear_kernel, relu=relu),
        out_shape=jax.ShapeDtypeStruct((n_pad, d_out_pad), jnp.float32),
        grid_spec=pltpu.PrefetchScalarGridSpec(
            num_scalar_prefetch=0,
            grid=(n_pad // tile_n,),
            in_specs=[
                pl.BlockSpec((tile_n, d_in), lambda i: (i, 0)),
                pl.BlockSpec((d_in, d_out_pad), lambda i: (0, 0)),
                pl.BlockSpec((1, d_out_pad), lambda i: (0, 0)),
            ],
            out_specs=pl.BlockSpec((tile_n, d_out_pad), lambda i: (i, 0)),
        ),
        compiler_params=pltpu.CompilerParams(
            dimension_semantics=("parallel",),
        ),
    )(x_p, w_p, b_p)
    return out[:n, :d_out]


# ------------------------------ FAGCN forward ---------------------------------


def fagcn_forward(x, params, graph, *, eps=0.3, layer_num=2):
    """Mirrors FAGCN.forward.  h is never fed forward in the reference module,
    so only the last iteration of each layer loop contributes to the output;
    dead iterations are skipped (identical result) and the two surviving gate
    propagations are fused into a single kernel launch."""
    h = linear(x, params["t1_w"], params["t1_b"], relu=True)
    raw = h

    i = layer_num - 1
    z_mu, z_logstd = fa_layer_pair(
        h, graph,
        params["gate2_w"][i], params["gate2_b"][i],
        params["gate3_w"][i], params["gate3_b"][i])

    h_mu = eps * raw + z_mu
    h_logstd = eps * raw + z_logstd

    mu = linear(h_mu, params["tmu_w"], params["tmu_b"], relu=False)
    logstd = linear(h_logstd, params["tlogstd_w"], params["tlogstd_b"], relu=False)
    return mu, logstd


# ------------------------------ pure-JAX reference ----------------------------


def fa_layer_ref(h, adj, d, gate_w, gate_b):
    d_feat = h.shape[1]
    s_dst = h @ gate_w[:d_feat]
    s_src = h @ gate_w[d_feat:]
    g = jnp.tanh(s_dst[:, None] + s_src[None, :] + gate_b)
    e = g * d[:, None] * d[None, :] * adj
    return e @ h


def fagcn_ref(x, params, adj, d, eps, layer_num):
    h = jnp.maximum(x @ params["t1_w"] + params["t1_b"], 0.0)
    raw = h
    h_mu = None
    for i in range(layer_num):
        h_mu = eps * raw + fa_layer_ref(h, adj, d, params["gate2_w"][i], params["gate2_b"][i])
    h_logstd = None
    for i in range(layer_num):
        h_logstd = eps * raw + fa_layer_ref(h, adj, d, params["gate3_w"][i], params["gate3_b"][i])
    mu = h_mu @ params["tmu_w"] + params["tmu_b"]
    logstd = h_logstd @ params["tlogstd_w"] + params["tlogstd_b"]
    return mu, logstd


# ------------------------------------ main ------------------------------------


if __name__ == "__main__":
    key = jax.random.PRNGKey(0)
    N = 128            # nodes
    in_dim = 16
    hidden = 32
    out_dim = 8
    layer_num = 2
    eps = 0.3

    keys = jax.random.split(key, 16)

    # Node features and a deterministic random graph (~8 avg degree).
    x = jax.random.normal(keys[0], (N, in_dim), dtype=jnp.float32)
    adj = (jax.random.uniform(keys[1], (N, N)) < (8.0 / N)).astype(jnp.float32)
    deg = jnp.maximum(adj.sum(axis=1), 1.0)
    d = 1.0 / jnp.sqrt(deg)            # FAGCN degree normalization d = deg^{-1/2}

    def xavier(k, shape, gain=1.0):
        fan_in, fan_out = shape
        std = gain * jnp.sqrt(2.0 / (fan_in + fan_out))
        return jax.random.normal(k, shape, dtype=jnp.float32) * std

    params = {
        "t1_w": xavier(keys[2], (in_dim, hidden)),
        "t1_b": jax.random.normal(keys[3], (hidden,), jnp.float32) * 0.05,
        "tmu_w": xavier(keys[4], (hidden, out_dim), gain=1.414),
        "tmu_b": jax.random.normal(keys[5], (out_dim,), jnp.float32) * 0.05,
        "tlogstd_w": xavier(keys[6], (hidden, out_dim), gain=1.414),
        "tlogstd_b": jax.random.normal(keys[7], (out_dim,), jnp.float32) * 0.05,
        "gate2_w": [xavier(keys[8 + i], (2 * hidden, 1), gain=1.414).reshape(-1)
                    for i in range(layer_num)],
        "gate2_b": [jax.random.normal(keys[10 + i], (), jnp.float32) * 0.1
                    for i in range(layer_num)],
        "gate3_w": [xavier(keys[12 + i], (2 * hidden, 1), gain=1.414).reshape(-1)
                    for i in range(layer_num)],
        "gate3_b": [jax.random.normal(keys[14 + i], (), jnp.float32) * 0.1
                    for i in range(layer_num)],
    }

    # Graph prep runs once per graph (hoisted out of the forward).
    graph = prepare_graph(adj, d)

    mu, logstd = fagcn_forward(x, params, graph, eps=eps, layer_num=layer_num)
    mu = jax.block_until_ready(mu)
    logstd = jax.block_until_ready(logstd)

    mu_ref, logstd_ref = fagcn_ref(x, params, adj, d, eps, layer_num)
    # bf16 tanh / bf16 MXU inputs -> slightly loosened tolerance vs f32 reference.
    assert jnp.allclose(mu, mu_ref, atol=3e-2, rtol=3e-2), "mu mismatch vs reference"
    assert jnp.allclose(logstd, logstd_ref, atol=3e-2, rtol=3e-2), "logstd mismatch vs reference"

    print("KERNEL_OK")
</pallas_src>

<mosaic_0001>
module attributes {stable_mosaic.version = 11 : i64} {
  func.func @linear_kernel(%arg0: i32, %arg1: memref<128x16xf32, #tpu.memory_space<vmem>>, %arg2: memref<16x128xf32, #tpu.memory_space<vmem>>, %arg3: memref<1x128xf32, #tpu.memory_space<vmem>>, %arg4: memref<128x128xf32, #tpu.memory_space<vmem>>) attributes {dimension_semantics = [#tpu.dimension_semantics<parallel>], iteration_bounds = array<i64: 1>, scalar_prefetch = 0 : i64, scratch_operands = 0 : i64, tpu.core_type = #tpu.core_type<tc>, window_params = [{transform_indices = @transform_0, window_bounds = array<i64: 128, 16>}, {pipeline_mode = #tpu.pipeline_mode<synchronous>, transform_indices = @transform_1, window_bounds = array<i64: 16, 128>}, {pipeline_mode = #tpu.pipeline_mode<synchronous>, transform_indices = @transform_2, window_bounds = array<i64: 1, 128>}, {transform_indices = @transform_3, window_bounds = array<i64: 128, 128>}]} {
    %c0 = arith.constant 0 : index
    %c0_0 = arith.constant 0 : index
    %0 = vector.load %arg1[%c0, %c0_0] : memref<128x16xf32, #tpu.memory_space<vmem>>, vector<128x16xf32>
    %c0_1 = arith.constant 0 : index
    %c0_2 = arith.constant 0 : index
    %1 = vector.load %arg2[%c0_1, %c0_2] : memref<16x128xf32, #tpu.memory_space<vmem>>, vector<16x128xf32>
    %cst = arith.constant dense<0.000000e+00> : vector<128x128xf32>
    %2 = tpu.matmul %0, %1, %cst {dimension_numbers = #tpu.dot_dimension_numbers<[1], [0], [0], [1], [0, 0, 1, 1], [], []>} : vector<128x16xf32>, vector<16x128xf32>, vector<128x128xf32> -> vector<128x128xf32>
    %c0_3 = arith.constant 0 : index
    %c0_4 = arith.constant 0 : index
    %3 = vector.load %arg3[%c0_3, %c0_4] : memref<1x128xf32, #tpu.memory_space<vmem>>, vector<1x128xf32>
    %4 = vector.broadcast %3 : vector<1x128xf32> to vector<128x128xf32>
    %5 = arith.addf %2, %4 : vector<128x128xf32>
    %cst_5 = arith.constant 0.000000e+00 : f32
    %6 = vector.broadcast %cst_5 : f32 to vector<128x128xf32>
    %7 = arith.maximumf %5, %6 : vector<128x128xf32>
    %c0_6 = arith.constant 0 : index
    %c0_7 = arith.constant 0 : index
    %8 = vector.load %arg4[%c0_6, %c0_7] : memref<128x128xf32, #tpu.memory_space<vmem>>, vector<128x128xf32>
    tpu.vector_store %arg4[%c0_6, %c0_7], %7 {strides = array<i32>} : memref<128x128xf32, #tpu.memory_space<vmem>>, vector<128x128xf32>,
    return
  }
  func.func @transform_0(%arg0: i32) -> (i32, i32) {
    %c0_i32 = arith.constant 0 : i32
    %c0_i32_0 = arith.constant 0 : i32
    return %arg0, %c0_i32 : i32, i32
  }
  func.func @transform_1(%arg0: i32) -> (i32, i32) {
    %c0_i32 = arith.constant 0 : i32
    %c0_i32_0 = arith.constant 0 : i32
    %c0_i32_1 = arith.constant 0 : i32
    return %c0_i32, %c0_i32_0 : i32, i32
  }
  func.func @transform_2(%arg0: i32) -> (i32, i32) {
    %c0_i32 = arith.constant 0 : i32
    %c0_i32_0 = arith.constant 0 : i32
    %c0_i32_1 = arith.constant 0 : i32
    return %c0_i32, %c0_i32_0 : i32, i32
  }
  func.func @transform_3(%arg0: i32) -> (i32, i32) {
    %c0_i32 = arith.constant 0 : i32
    %c0_i32_0 = arith.constant 0 : i32
    return %arg0, %c0_i32 : i32, i32
  }
}

</mosaic_0001>

<bundles_post_ra>
// kernel: tpu_custom_call.1
= control target key start
LH: loop header
LB: loop body
LE: loop exit
PB: predicated region body
PF: predicated region fallthrough
CT: control target
= control target key end

     0   :  { %vm40_vm0 = vcmask 130048   ;;  %s486_s0 = inlined_call_operand.vmem [shape: f32[128,16], index: 0, kind: input, shape index: {}]   ;;  %s487_s1 = inlined_call_operand.vmem [shape: f32[16,128], index: 1, kind: input, shape index: {}]   ;;  %s488_s2 = inlined_call_operand.vmem [shape: f32[1,128], index: 2, kind: input, shape index: {}]   ;;  %s489_s3 = inlined_call_operand.hbm [shape: f32[128,128], index: 3, kind: output, shape index: {}]  }
   0x1   :  { %v31_v0 = vld [vmem:[%s487_s1] sm:$0xff]  ;;  %v32_v1 = vld [vmem:[%s487_s1 + $0x8] sm:$0xff]  ;;  %v17_v7 = vld [vmem:[%s486_s0 + $0x10] sm:$0xff] }
   0x2   :  { %v15_v2 = vld [vmem:[%s486_s0] sm:$0xff]  ;;  %v345_v3 = vpack.c.bf16 %v32_v1, %v31_v0  ;;  %v16_v5 = vld [vmem:[%s486_s0 + $0x8] sm:$0xff]  ;;  %v25_v8 = vld [vmem:[%s486_s0 + $0x50] sm:$0xff] }
   0x3   :  { %321 = vmatprep.mubr.msk.f32.mxu0 %vm40_vm0, %v15_v2  ;;  %v23_v4 = vld [vmem:[%s486_s0 + $0x40] sm:$0xff]  ;;  %v24_v6 = vld [vmem:[%s486_s0 + $0x48] sm:$0xff] }
   0x4   :  { %333 = vmatprep.mubr.msk.f32.mxu1 %vm40_vm0, %v23_v4  ;;  %346 = vmatprep.subr.bf16.mxu0 %v345_v3 }
   0x5   :  { %349 = vmatprep.subr.bf16.mxu1 %v345_v3  ;;  %348 = vmatpush3.bf16.msra.mxu0 %v345_v3 }
   0x6   :  { %350 = vmatpush3.bf16.msra.mxu1 %v345_v3 }
   0x7   :  { %8 = vsyncpa [#allocation3], 0  ;;  %v18_v9 = vld [vmem:[%s486_s0 + $0x18] sm:$0xff]  ;;  %v19_v11 = vld [vmem:[%s486_s0 + $0x20] sm:$0xff] }
   0x8   :  { %322 = vmatmul.mubr.msk.f32.vlgmr.msra.gmra.mrb[0].mxu0 %vm40_vm0, %v16_v5  ;;  %v26_v10 = vld [vmem:[%s486_s0 + $0x58] sm:$0xff]  ;;  %v27_v12 = vld [vmem:[%s486_s0 + $0x60] sm:$0xff]  ;;  %v20_v13 = vld [vmem:[%s486_s0 + $0x28] sm:$0xff] }
   0x9   :  { %334 = vmatmul.mubr.msk.f32.vlgmr.msra.gmra.mrb[0].mxu1 %vm40_vm0, %v24_v6  ;;  %324 = vmatprep.mubr.msk.f32.mxu0 %vm40_vm0, %v17_v7  ;;  %v28_v14 = vld [vmem:[%s486_s0 + $0x68] sm:$0xff]  ;;  %v21_v15 = vld [vmem:[%s486_s0 + $0x30] sm:$0xff]  ;;  %v22_v17 = vld [vmem:[%s486_s0 + $0x38] sm:$0xff] }
   0xa   :  { %336 = vmatprep.mubr.msk.f32.mxu1 %vm40_vm0, %v25_v8  ;;  %v29_v16 = vld [vmem:[%s486_s0 + $0x70] sm:$0xff]  ;;  %v30_v18 = vld [vmem:[%s486_s0 + $0x78] sm:$0xff]  ;;  %v282_v19 = vld [vmem:[%s488_s2] ss:$0 sm:$0xff]  ;;  %s378_s0 = smov [#allocation2]  }
   0xb   :  { %s271_s2 = sshll.u32 %s378_s0, 4  ;;  %s272_s2 = int_to_ptr.vmem [resolvable:$true] %s271_s2 }
   0xc   :  { %325 = vmatmul.mubr.msk.f32.gmra.mrb[2].mxu0 %vm40_vm0, %v18_v9  ;;  %s354_s21 = scalar_lea.vmem %s272_s2, 2048  ;;  %p359_p1 = scmp.lt.s32.totalorder %s272_s2, %s272_s2 }
   0xd   :  { %337 = vmatmul.mubr.msk.f32.gmra.mrb[2].mxu1 %vm40_vm0, %v26_v10  ;;  %327 = vmatprep.mubr.msk.f32.mxu0 %vm40_vm0, %v19_v11  ;;  %p355_p0 = scmp.ne.s32.totalorder %s272_s2, %s354_s21  ;;  %p360_p2 = scmp.lt.s32.totalorder %s354_s21, %s354_s21 }
   0xe   :  { %339 = vmatprep.mubr.msk.f32.mxu1 %vm40_vm0, %v27_v12 }
   0xf   :  { %p361_p3 = por %p360_p2, %p359_p1 }
  0x10   :  { %328 = vmatmul.mubr.msk.f32.gmra.mrb[4].mxu0 %vm40_vm0, %v20_v13 }
  0x11   :  { %340 = vmatmul.mubr.msk.f32.gmra.mrb[4].mxu1 %vm40_vm0, %v28_v14  ;;  %330 = vmatprep.mubr.msk.f32.mxu0 %vm40_vm0, %v21_v15  ;;  %p362_p4 = pnand %p361_p3, %p355_p0 }
  0x12   :  { %342 = vmatprep.mubr.msk.f32.mxu1 %vm40_vm0, %v29_v16 }
  0x14   :  { %331 = vmatmul.mubr.msk.f32.gmra.mrb[6].mxu0 %vm40_vm0, %v22_v17 }
  0x15   :  { %343 = vmatmul.mubr.msk.f32.gmra.mrb[6].mxu1 %vm40_vm0, %v30_v18 }
  0xdb   :  { %v323_v20 = vpop.f32.mrb[0].mxu0 }
  0xdc   :  { %v335_v21 = vpop.f32.mrb[0].mxu1  ;;  %v161_v22 = vadd.f32 %v323_v20, %v282_v19  ;;  %v155_v24 = vpop.f32.mrb[1].mxu0 }
  0xdd   :  { %v201_v23 = vadd.f32 %v335_v21, %v282_v19  ;;  %v195_v25 = vpop.f32.mrb[1].mxu1  ;;  %v156_v26 = vadd.f32 %v282_v19, %v155_v24 }
  0xde   :  { %v196_v27 = vadd.f32 %v282_v19, %v195_v25  ;;  %v235_v28 = vmax.f32 %v161_v22, 0.0 }
  0xdf   :  { %v243_v29 = vmax.f32 %v201_v23, 0.0  ;;  %v234_v30 = vmax.f32 %v156_v26, 0.0  ;;  %v326_v32 = vpop.f32.mrb[2].mxu0 }
  0xe0   :  { %v242_v31 = vmax.f32 %v196_v27, 0.0  ;;  %v338_v33 = vpop.f32.mrb[2].mxu1  ;;  %251 = vst [vmem:[#allocation2 + $0x8] sm:$0xff] %v235_v28  ;;  %v171_v34 = vadd.f32 %v326_v32, %v282_v19  ;;  %v165_v36 = vpop.f32.mrb[3].mxu0 }
  0xe1   :  { %259 = vst [vmem:[#allocation2 + $0x48] sm:$0xff] %v243_v29  ;;  %v211_v35 = vadd.f32 %v338_v33, %v282_v19  ;;  %v205_v37 = vpop.f32.mrb[3].mxu1  ;;  %250 = vst [vmem:[#allocation2] sm:$0xff] %v234_v30  ;;  %v166_v38 = vadd.f32 %v282_v19, %v165_v36 }
  0xe2   :  { %258 = vst [vmem:[#allocation2 + $0x40] sm:$0xff] %v242_v31  ;;  %v206_v39 = vadd.f32 %v282_v19, %v205_v37  ;;  %v237_v40 = vmax.f32 %v171_v34, 0.0 }
  0xe3   :  { %v245_v41 = vmax.f32 %v211_v35, 0.0  ;;  %v236_v42 = vmax.f32 %v166_v38, 0.0  ;;  %v329_v44 = vpop.f32.mrb[4].mxu0 }
  0xe4   :  { %v244_v43 = vmax.f32 %v206_v39, 0.0  ;;  %v341_v45 = vpop.f32.mrb[4].mxu1  ;;  %253 = vst [vmem:[#allocation2 + $0x18] sm:$0xff] %v237_v40  ;;  %v181_v46 = vadd.f32 %v329_v44, %v282_v19  ;;  %v175_v48 = vpop.f32.mrb[5].mxu0 }
  0xe5   :  { %261 = vst [vmem:[#allocation2 + $0x58] sm:$0xff] %v245_v41  ;;  %v221_v47 = vadd.f32 %v341_v45, %v282_v19  ;;  %v215_v49 = vpop.f32.mrb[5].mxu1  ;;  %252 = vst [vmem:[#allocation2 + $0x10] sm:$0xff] %v236_v42  ;;  %v176_v50 = vadd.f32 %v282_v19, %v175_v48 }
  0xe6   :  { %260 = vst [vmem:[#allocation2 + $0x50] sm:$0xff] %v244_v43  ;;  %v216_v51 = vadd.f32 %v282_v19, %v215_v49  ;;  %v239_v52 = vmax.f32 %v181_v46, 0.0 }
  0xe7   :  { %v247_v53 = vmax.f32 %v221_v47, 0.0  ;;  %v238_v54 = vmax.f32 %v176_v50, 0.0  ;;  %v332_v56 = vpop.f32.mrb[6].mxu0 }
  0xe8   :  { %v246_v55 = vmax.f32 %v216_v51, 0.0  ;;  %v344_v57 = vpop.f32.mrb[6].mxu1  ;;  %255 = vst [vmem:[#allocation2 + $0x28] sm:$0xff] %v239_v52  ;;  %v191_v58 = vadd.f32 %v332_v56, %v282_v19  ;;  %v185_v60 = vpop.f32.mrb[7].mxu0 }
  0xe9   :  { %263 = vst [vmem:[#allocation2 + $0x68] sm:$0xff] %v247_v53  ;;  %v231_v59 = vadd.f32 %v344_v57, %v282_v19  ;;  %v225_v61 = vpop.f32.mrb[7].mxu1  ;;  %254 = vst [vmem:[#allocation2 + $0x20] sm:$0xff] %v238_v54  ;;  %v186_v62 = vadd.f32 %v282_v19, %v185_v60 }
  0xea   :  { %262 = vst [vmem:[#allocation2 + $0x60] sm:$0xff] %v246_v55  ;;  %v226_v63 = vadd.f32 %v282_v19, %v225_v61  ;;  %v241_v0 = vmax.f32 %v191_v58, 0.0 }
  0xeb   :  { %v249_v1 = vmax.f32 %v231_v59, 0.0  ;;  %v240_v2 = vmax.f32 %v186_v62, 0.0 }
  0xec   :  { %v248_v3 = vmax.f32 %v226_v63, 0.0  ;;  %257 = vst [vmem:[#allocation2 + $0x38] sm:$0xff] %v241_v0 }
  0xed   :  { %265 = vst [vmem:[#allocation2 + $0x78] sm:$0xff] %v249_v1  ;;  %256 = vst [vmem:[#allocation2 + $0x30] sm:$0xff] %v240_v2 }
  0xee   :  { %264 = vst [vmem:[#allocation2 + $0x70] sm:$0xff] %v248_v3 }
  0xef   :  { %365 = shalt.err (!%p362_p4)
}
  0xf0   :  { %s366_s24 = scalar_lea.hbm %s489_s3, 2048 }
  0xf1   :  { %p367_p5 = scmp.ne.s32.totalorder %s489_s3, %s366_s24  ;;  %p370_p6 = scmp.lt.u32.totalorder %s366_s24, %s489_s3 }
  0xf3   :  { %p372_p7 = pnand %p370_p6, %p367_p5 }
  0xf5   :  { %375 = shalt.err (!%p372_p7)
}
  0xf6   :  { %s379_s29 = smov 128   ;;  %s380_s30 = smov 8  }
  0xf7   :  { %277 = dma.vmem_to_hbm [thread:$0]  %s272_s2, 2048, %s489_s3, [#allocation3], %s379_s29, %s379_s29, %s380_s30  }
  0xf8   :  { %376 = dma.done.wait [#allocation3], 2048  }
  0xf9   :  { %377 = vsyncadd [#allocation3], 4294965248 }
  0xfa   :  { %281 = vsyncpa [#allocation3], 1 }

</bundles_post_ra>
